<compile_context>
chip_gen: v6e
topology: v6e:2x2x1
jax: 0.10.0
libtpu: 0.0.40
codegen_flags: <defaults>
</compile_context>

<pallas_src>
import math
import functools

import jax
import jax.numpy as jnp
from jax.experimental import pallas as pl
from jax.experimental.pallas import tpu as pltpu


def _ffn_kernel(x_ref, w1t_ref, b1_ref, w2t_ref, b2_ref, o_ref):
    """Fused FFN tile: (TM, D_in) -> (TM, D_out).

    Refs (VMEM tiles):
      x_ref   : (TM, D_in)   input rows (bf16 cast happens in-kernel)
      w1t_ref : (D_in, F)    pre-transposed Linear1 weight, bf16
      b1_ref  : (1, F)       Linear1 bias, f32
      w2t_ref : (F, D_out)   pre-transposed Linear2 weight, bf16
      b2_ref  : (1, D_out)   Linear2 bias, f32
      o_ref   : (TM, D_out)
    """
    x = x_ref[...].astype(jnp.bfloat16)                                 # (TM, D_in)

    # Linear1 + ReLU (bf16 MXU matmul, f32 accumulation, f32 epilogue)
    h = jnp.dot(x, w1t_ref[...], preferred_element_type=jnp.float32)    # (TM, F)
    h = jnp.maximum(h + b1_ref[0], 0.0)

    # Linear2
    y = jnp.dot(h.astype(jnp.bfloat16), w2t_ref[...],
                preferred_element_type=jnp.float32)                      # (TM, D_out)
    y = y + b2_ref[0]

    # Dropout: eval mode -> identity.
    o_ref[...] = y.astype(o_ref.dtype)


def _pick_row_tile(m: int) -> int:
    """Largest row tile that (a) divides M, (b) is a multiple of 8, and
    (c) leaves >= 2 grid steps (pipeline depth / v7x 2-TC balance)."""
    for t in (512, 256, 128, 64, 32, 16, 8):
        if m % t == 0 and m // t >= 2:
            return t
    return m  # fall back to a single full-extent block


def feed_forward_net(x, params, *, tile_m=None):
    """x: (..., input_dim) float32.  params: {'w1','b1','w2','b2'} PyTorch layout."""
    orig_shape = x.shape
    d_in = orig_shape[-1]
    ffn_dim = params["w1"].shape[0]
    d_out = params["w2"].shape[0]

    x2 = x.reshape(-1, d_in)
    m = x2.shape[0]

    if tile_m is None:
        tile_m = _pick_row_tile(m)
    assert tile_m == m or (m % tile_m == 0 and tile_m % 8 == 0), \
        "row tile must divide M and be a multiple of 8 (or equal M)"

    # Pre-transpose + bf16-cast the weights once in XLA (no per-tile in-kernel
    # transpose / relayout).  Biases stay f32 for the f32 epilogue.
    w1t = params["w1"].T.astype(jnp.bfloat16)           # (D_in, F)
    w2t = params["w2"].T.astype(jnp.bfloat16)           # (F, D_out)
    b1 = params["b1"].reshape(1, ffn_dim).astype(jnp.float32)
    b2 = params["b2"].reshape(1, d_out).astype(jnp.float32)

    grid = (m // tile_m,)

    out = pl.pallas_call(
        _ffn_kernel,
        out_shape=jax.ShapeDtypeStruct((m, d_out), x.dtype),
        grid_spec=pltpu.PrefetchScalarGridSpec(
            num_scalar_prefetch=0,
            grid=grid,
            in_specs=[
                pl.BlockSpec((tile_m, d_in), lambda i: (i, 0)),   # x rows (streamed)
                pl.BlockSpec((d_in, ffn_dim), lambda i: (0, 0)),  # W1^T (resident)
                pl.BlockSpec((1, ffn_dim), lambda i: (0, 0)),     # b1   (resident)
                pl.BlockSpec((ffn_dim, d_out), lambda i: (0, 0)), # W2^T (resident)
                pl.BlockSpec((1, d_out), lambda i: (0, 0)),       # b2   (resident)
            ],
            out_specs=pl.BlockSpec((tile_m, d_out), lambda i: (i, 0)),
        ),
        compiler_params=pltpu.CompilerParams(
            dimension_semantics=("parallel",)),
    )(x2, w1t, b1, w2t, b2)

    return out.reshape(*orig_shape[:-1], d_out)


def _reference(x, params):
    """Pure-JAX f32 reference replicating the PyTorch forward (eval mode)."""
    h = jnp.maximum(x @ params["w1"].T + params["b1"], 0.0)
    return h @ params["w2"].T + params["b2"]


if __name__ == "__main__":
    # Small shapes consistent with the module: x is (batch, seq, input_dim).
    batch, seq_len = 2, 8
    input_dim, ffn_dim, output_dim = 32, 64, 32

    key0 = jax.random.PRNGKey(0)
    k_x, k_w1, k_b1, k_w2, k_b2 = jax.random.split(key0, 5)

    x = jax.random.normal(k_x, (batch, seq_len, input_dim), jnp.float32)

    # PyTorch nn.Linear default init scale: U(-1/sqrt(fan_in), 1/sqrt(fan_in)).
    b1_bound = 1.0 / math.sqrt(input_dim)
    b2_bound = 1.0 / math.sqrt(ffn_dim)
    params = {
        "w1": jax.random.uniform(k_w1, (ffn_dim, input_dim), jnp.float32,
                                 -b1_bound, b1_bound),
        "b1": jax.random.uniform(k_b1, (ffn_dim,), jnp.float32,
                                 -b1_bound, b1_bound),
        "w2": jax.random.uniform(k_w2, (output_dim, ffn_dim), jnp.float32,
                                 -b2_bound, b2_bound),
        "b2": jax.random.uniform(k_b2, (output_dim,), jnp.float32,
                                 -b2_bound, b2_bound),
    }

    out = feed_forward_net(x, params)
    out = jax.block_until_ready(out)

    ref = _reference(x, params)
    assert out.shape == (batch, seq_len, output_dim)
    # bf16 MXU matmuls with f32 accumulation -> tolerance loosened vs pure f32.
    assert jnp.allclose(out, ref, atol=2e-2, rtol=2e-2), "mismatch vs reference"

    print("KERNEL_OK")
</pallas_src>

<mosaic_0001>
module attributes {stable_mosaic.version = 11 : i64} {
  func.func @_ffn_kernel(%arg0: i32, %arg1: memref<8x32xf32, #tpu.memory_space<vmem>>, %arg2: memref<32x64xbf16, #tpu.memory_space<vmem>>, %arg3: memref<1x64xf32, #tpu.memory_space<vmem>>, %arg4: memref<64x32xbf16, #tpu.memory_space<vmem>>, %arg5: memref<1x32xf32, #tpu.memory_space<vmem>>, %arg6: memref<8x32xf32, #tpu.memory_space<vmem>>) attributes {dimension_semantics = [#tpu.dimension_semantics<parallel>], iteration_bounds = array<i64: 2>, scalar_prefetch = 0 : i64, scratch_operands = 0 : i64, tpu.core_type = #tpu.core_type<tc>, window_params = [{transform_indices = @transform_0, window_bounds = array<i64: 8, 32>}, {pipeline_mode = #tpu.pipeline_mode<synchronous>, transform_indices = @transform_1, window_bounds = array<i64: 32, 64>}, {pipeline_mode = #tpu.pipeline_mode<synchronous>, transform_indices = @transform_2, window_bounds = array<i64: 1, 64>}, {pipeline_mode = #tpu.pipeline_mode<synchronous>, transform_indices = @transform_3, window_bounds = array<i64: 64, 32>}, {pipeline_mode = #tpu.pipeline_mode<synchronous>, transform_indices = @transform_4, window_bounds = array<i64: 1, 32>}, {transform_indices = @transform_5, window_bounds = array<i64: 8, 32>}]} {
    %c0 = arith.constant 0 : index
    %c0_0 = arith.constant 0 : index
    %0 = vector.load %arg1[%c0, %c0_0] : memref<8x32xf32, #tpu.memory_space<vmem>>, vector<8x32xf32>
    %1 = arith.truncf %0 : vector<8x32xf32> to vector<8x32xbf16>
    %c0_1 = arith.constant 0 : index
    %c0_2 = arith.constant 0 : index
    %2 = vector.load %arg2[%c0_1, %c0_2] : memref<32x64xbf16, #tpu.memory_space<vmem>>, vector<32x64xbf16>
    %cst = arith.constant dense<0.000000e+00> : vector<8x64xf32>
    %3 = tpu.matmul %1, %2, %cst {dimension_numbers = #tpu.dot_dimension_numbers<[1], [0], [0], [1], [0, 0, 1, 1], [], []>} : vector<8x32xbf16>, vector<32x64xbf16>, vector<8x64xf32> -> vector<8x64xf32>
    %c0_3 = arith.constant 0 : index
    %c0_4 = arith.constant 0 : index
    %4 = vector.load %arg3[%c0_3, %c0_4] : memref<1x64xf32, #tpu.memory_space<vmem>>, vector<1x64xf32>
    %5 = vector.shape_cast %4 : vector<1x64xf32> to vector<64xf32>
    %6 = vector.shape_cast %5 : vector<64xf32> to vector<1x64xf32>
    %7 = vector.broadcast %6 : vector<1x64xf32> to vector<8x64xf32>
    %8 = arith.addf %3, %7 : vector<8x64xf32>
    %cst_5 = arith.constant 0.000000e+00 : f32
    %9 = vector.broadcast %cst_5 : f32 to vector<8x64xf32>
    %10 = arith.maximumf %8, %9 : vector<8x64xf32>
    %11 = arith.truncf %10 : vector<8x64xf32> to vector<8x64xbf16>
    %c0_6 = arith.constant 0 : index
    %c0_7 = arith.constant 0 : index
    %12 = vector.load %arg4[%c0_6, %c0_7] : memref<64x32xbf16, #tpu.memory_space<vmem>>, vector<64x32xbf16>
    %cst_8 = arith.constant dense<0.000000e+00> : vector<8x32xf32>
    %13 = tpu.matmul %11, %12, %cst_8 {dimension_numbers = #tpu.dot_dimension_numbers<[1], [0], [0], [1], [0, 0, 1, 1], [], []>} : vector<8x64xbf16>, vector<64x32xbf16>, vector<8x32xf32> -> vector<8x32xf32>
    %c0_9 = arith.constant 0 : index
    %c0_10 = arith.constant 0 : index
    %14 = vector.load %arg5[%c0_9, %c0_10] : memref<1x32xf32, #tpu.memory_space<vmem>>, vector<1x32xf32>
    %15 = vector.shape_cast %14 : vector<1x32xf32> to vector<32xf32>
    %16 = vector.shape_cast %15 : vector<32xf32> to vector<1x32xf32>
    %17 = vector.broadcast %16 : vector<1x32xf32> to vector<8x32xf32>
    %18 = arith.addf %13, %17 : vector<8x32xf32>
    %c0_11 = arith.constant 0 : index
    %c0_12 = arith.constant 0 : index
    %19 = vector.load %arg6[%c0_11, %c0_12] : memref<8x32xf32, #tpu.memory_space<vmem>>, vector<8x32xf32>
    tpu.vector_store %arg6[%c0_11, %c0_12], %18 {strides = array<i32>} : memref<8x32xf32, #tpu.memory_space<vmem>>, vector<8x32xf32>,
    return
  }
  func.func @transform_0(%arg0: i32) -> (i32, i32) {
    %c0_i32 = arith.constant 0 : i32
    %c0_i32_0 = arith.constant 0 : i32
    return %arg0, %c0_i32 : i32, i32
  }
  func.func @transform_1(%arg0: i32) -> (i32, i32) {
    %c0_i32 = arith.constant 0 : i32
    %c0_i32_0 = arith.constant 0 : i32
    %c0_i32_1 = arith.constant 0 : i32
    return %c0_i32, %c0_i32_0 : i32, i32
  }
  func.func @transform_2(%arg0: i32) -> (i32, i32) {
    %c0_i32 = arith.constant 0 : i32
    %c0_i32_0 = arith.constant 0 : i32
    %c0_i32_1 = arith.constant 0 : i32
    return %c0_i32, %c0_i32_0 : i32, i32
  }
  func.func @transform_3(%arg0: i32) -> (i32, i32) {
    %c0_i32 = arith.constant 0 : i32
    %c0_i32_0 = arith.constant 0 : i32
    %c0_i32_1 = arith.constant 0 : i32
    return %c0_i32, %c0_i32_0 : i32, i32
  }
  func.func @transform_4(%arg0: i32) -> (i32, i32) {
    %c0_i32 = arith.constant 0 : i32
    %c0_i32_0 = arith.constant 0 : i32
    %c0_i32_1 = arith.constant 0 : i32
    return %c0_i32, %c0_i32_0 : i32, i32
  }
  func.func @transform_5(%arg0: i32) -> (i32, i32) {
    %c0_i32 = arith.constant 0 : i32
    %c0_i32_0 = arith.constant 0 : i32
    return %arg0, %c0_i32 : i32, i32
  }
}

</mosaic_0001>

<bundles_post_ra>
// kernel: tpu_custom_call.1
= control target key start
LH: loop header
LB: loop body
LE: loop exit
PB: predicated region body
PF: predicated region fallthrough
CT: control target
= control target key end

     0   :  { %10 = vsyncpa [#allocation3], 0  ;;  %s764_s0 = inlined_call_operand.vmem [shape: f32[16,32], index: 0, kind: input, shape index: {}]   ;;  %s765_s1 = inlined_call_operand.vmem [shape: bf16[32,64], index: 1, kind: input, shape index: {}]   ;;  %s766_s2 = inlined_call_operand.vmem [shape: f32[1,64], index: 2, kind: input, shape index: {}]   ;;  %s767_s3 = inlined_call_operand.vmem [shape: bf16[64,32], index: 3, kind: input, shape index: {}]   ;;  %s768_s4 = inlined_call_operand.vmem [shape: f32[1,32], index: 4, kind: input, shape index: {}]   ;;  %s769_s5 = inlined_call_operand.hbm [shape: f32[16,32], index: 5, kind: output, shape index: {}]  }
   0x1   :  { %12 = vsyncpa [#allocation3 + $0x1], 0  ;;  %s639_s18 = smov 0   ;;  %s641_s19 = smov 0  }
   0x2   :  { %s643_s20 = smov 0   ;;  %s645_s21 = smov 0  }
   0x3 LB: > { %s660_s22 = sadd.s32 4294967295, %s604_s21   ;;  %s449_s23 = sadd.s32 4294967294, %s604_s21   ;;  %s604_s21 = sphi %s645_s21, %s775_s21   ;;  %s600_s20 = sphi %s643_s20, %s774_s20   ;;  %s596_s19 = sphi %s641_s19, %s773_s19   ;;  %s592_s18 = sphi %s639_s18, %s772_s18  }
   0x4   : > { %s664_s24 = sadd.s32 1, %s604_s21   ;;  %s135_s25 = sadd.s32 1, %s600_s20 }
   0x5   : > { %s132_s26 = ssub.s32 %s604_s21, %s664_s24  ;;  %p145_p0 = scmp.ne.s32.totalorder %s600_s20, %s596_s19 }
   0x6   : > { %p133_p1 = scmp.eq.s32.totalorder %s132_s26, 0  ;;  %p146_p2 = scmp.eq.s32.totalorder %s660_s22, 1 }
   0x7   : > { %p151_p3 = scmp.ne.s32.totalorder %s596_s19, %s592_s18  ;;  %p152_p4 = scmp.eq.s32.totalorder %s449_s23, 1 }
   0x8   : > { %s675_s27 = scalar_select %p133_p1, %s600_s20, %s135_s25  }
   0x9   : > { %p677_p5 = por %p146_p2, %p145_p0  ;;  %p681_p6 = por %p152_p4, %p151_p3 }
   0xa   : > { %p452_p7 = scmp.ge.s32.totalorder %s604_s21, 1  ;;  %p189_p8 = scmp.lt.s32.totalorder %s604_s21, 3 }
   0xc   : > { %p190_p9 = pnand %p452_p7, %p189_p8 }
   0xd   : > { %p216_p10 = scmp.lt.s32.totalorder (!%p190_p9), %s660_s22, 1  ;;  %s213_s8 = sand.u32 (!%p190_p9), 1, %s596_s19  }
   0xe   : > { %193 = sbr.rel (%p190_p9) target bundleno = 436 (0x1b4), region = 40  ;;  %s453_s9 = sshll.u32 (!%p190_p9), %s213_s8, 3 }
   0xf   : > { %s466_s12 = sshll.u32 (!%p190_p9), %s660_s22, 7  ;;  %s215_s13 = scalar_lea.vmem (!%p190_p9), [#allocation2], %s453_s9 }
  0x10   : > { %s377_s23 = scalar_lea.sflag (!%p190_p9), [#allocation3], %s213_s8  ;;  %s608_s25 = smov (!%p190_p9), [#allocation2]  }
  0x11   : > { %s548_s26 = sshll.u32 (!%p190_p9), %s608_s25, 4  ;;  %s549_s26 = int_to_ptr.vmem [resolvable:$false] %s548_s26 }
  0x12   : > { %s550_s30 = scalar_lea.vmem (!%p190_p9), %s549_s26, 256 }
  0x13   : > { %v538_v0 = vld [vmem:[%s765_s1 + $0x8] sm:$0xff]   ;;  %v606_v1 = vmov 0.0   ;;  %v539_v2 = vld [vmem:[%s765_s1] sm:$0xff]   ;;  %vm607_vm0 = vmmov 0   ;;  %v540_v3 = vld [vmem:[%s767_s3 + $0x18] sm:$0xff]   ;;  %s217_s11 = scalar_select %p216_p10, %s660_s22, 1 }
  0x14   : > { %477 = vmatprep.subr.bf16.mxu0 %v606_v1  ;;  %485 = vmatprep.subr.bf16.mxu1 %v606_v1  ;;  %v541_v4 = vld [vmem:[%s767_s3 + $0x10] sm:$0xff]   ;;  %vm246_vm1 = vcmask 261120   ;;  %v542_v7 = vld [vmem:[%s767_s3 + $0x8] sm:$0xff]   ;;  %v543_v8 = vld [vmem:[%s767_s3] sm:$0xff]   ;;  %vm331_vm2 = vcmask 523264  }
  0x15   : > { %478 = vmatpush3.bf16.msra.mxu0 %v538_v0  ;;  %481 = vmatprep.mubr.msk.bf16.mxu0 %vm607_vm0, %v606_v1  ;;  %s454_s14 = sshll.u32 %s217_s11, 3  ;;  %v455_v9 = vld [vmem:[%s766_s2] ss:$0 sm:$0xff] }
  0x16   : > { %479 = vmatprep.subr.bf16.mxu0 %v606_v1  ;;  %493 = vmatprep.mubr.msk.bf16.mxu1 %vm607_vm0, %v606_v1  ;;  %s219_s17 = scalar_lea.vmem %s764_s0, %s454_s14  ;;  %v459_v17 = vld [vmem:[%s768_s4] ss:$0 sm:$0xff]  ;;  %s390_s14 = sshll.u32 %s215_s13, 4  ;;  %s724_s14 = int_to_ptr.vmem [resolvable:$true] %s390_s14 }
  0x17   : > { %486 = vmatpush3.bf16.msra.mxu1 %v540_v3  ;;  %v221_v5 = vld [vmem:[%s219_s17] sm:$0xff]  ;;  %s722_s17 = scalar_lea.hbm %s769_s5, %s466_s12  ;;  %s544_s22 = scalar_lea.vmem %s724_s14, 128 }
  0x18   : > { %487 = vmatprep.subr.bf16.mxu1 %v606_v1  ;;  %v222_v6 = vpack.c.bf16 %v221_v5, %v221_v5  ;;  %p545_p11 = scmp.ne.s32.totalorder %s724_s14, %s544_s22  ;;  %p551_p0 = scmp.lt.s32.totalorder %s724_s14, %s549_s26 }
  0x19   : > { %480 = vmatpush3.bf16.msra.mxu0 %v539_v2  ;;  %p552_p1 = scmp.lt.s32.totalorder %s550_s30, %s544_s22 }
  0x1a   : > { %p546_p12 = pnand %p545_p11, %p677_p5 }
  0x1b   : > { %488 = vmatpush3.bf16.msra.mxu1 %v541_v4  ;;  %p553_p2 = por %p552_p1, %p551_p0 }
  0x1c   : > { %489 = vmatprep.subr.bf16.mxu1 %v606_v1  ;;  %482 = vmatmul.mubr.msk.bf16.vlgmr.msra.gmra.mxu0 %vm246_vm1, %v222_v6  ;;  %p547_p13 = pneg %p546_p12 }
  0x1e   : > { %p554_p3 = pnand %p553_p2, %p547_p13 }
  0x1f   : > { %490 = vmatpush3.bf16.msra.mxu1 %v542_v7 }
  0x20   : > { %491 = vmatprep.subr.bf16.mxu1 %v606_v1 }
  0x23   : > { %492 = vmatpush3.bf16.msra.mxu1 %v543_v8 }
  0xdc   : > { %v284_v10 = vpop.f32.mrf.mxu0 }
  0xdd   : > { %v285_v11 = vadd.f32 %v455_v9, %v284_v10 }
  0xde   : > { %v483_v12 = vpop.f32.mrf.mxu0 }
  0xdf   : > { %v290_v13 = vmax.f32 %v285_v11, 0.0 }
  0xe0   : > { %v287_v14 = vpop.f32.mrf.mxu0 }
  0xe1   : > { %v291_v15 = vpack.c.bf16 %v290_v13, %v290_v13 }
  0xe2   : > { %v484_v16 = vpop.f32.mrf.mxu0 }
  0xe3   : > { %494 = vmatmul.mubr.msk.bf16.vlgmr.msra.gmra.mxu1 %vm331_vm2, %v291_v15 }
 0x1a3   : > { %v369_v18 = vpop.f32.mrf.mxu1 }
 0x1a4   : > { %v370_v19 = vadd.f32 %v459_v17, %v369_v18 }
 0x1a5   : > { %v495_v20 = vpop.f32.mrf.mxu1 }
 0x1a6   : > { %375 = vst.msk [vmem:[%s215_s13] sm:$0xff] %vm246_vm1, %v370_v19 }
 0x1a7   : > { %v372_v21 = vpop.f32.mrf.mxu1 }
 0x1a8   : > { %557 = shalt.err (!%p554_p3)
}
 0x1a9   : > { %s558_s6 = scalar_lea.hbm %s722_s17, 128  ;;  %s562_s9 = scalar_lea.hbm %s769_s5, 256 }
 0x1aa   : > { %p559_p4 = scmp.ne.s32.totalorder %s722_s17, %s558_s6  ;;  %p563_p9 = scmp.lt.s32.totalorder %s722_s17, %s769_s5 }
 0x1ab   : > { %p564_p10 = scmp.lt.s32.totalorder %s562_s9, %s558_s6 }
 0x1ac   : > { %p560_p7 = pnand %p559_p4, %p677_p5 }
 0x1ad   : > { %p565_p11 = por %p564_p10, %p563_p9 }
 0x1ae   : > { %p561_p8 = pneg %p560_p7 }
 0x1b0   : > { %p566_p12 = pnand %p565_p11, %p561_p8 }
 0x1b2   : > { %569 = shalt.err (!%p566_p12)
}
 0x1b3   : > { %497 = dma.vmem_to_hbm [thread:$0]  (%p677_p5), %s724_s14, 128, %s722_s17, %s377_s23   ;;  %v496_v22 = vpop.f32.mrf.mxu1 }
 0x1b4 PF: > { %p503_p13 = scmp.ge.s32.totalorder %s604_s21, 2  ;;  %s402_s12 = sand.u32 1, %s592_s18  }
 0x1b5   : > { %s403_s13 = scalar_lea.sflag [#allocation3], %s402_s12 }
 0x1b6   : > { %p500_p0 = pnand %p503_p13, %p681_p6 }
 0x1b8   : > { %p501_p1 = pneg %p500_p0 }
 0x1ba   : > { %587 = dma.done.wait (%p501_p1), %s403_s13, 128  }
 0x1bb   : > { %589 = vsyncadd (%p501_p1), %s403_s13, 4294967168  ;;  %p15_p2 = scmp.ge.s32.totalorder %s664_s24, 4   ;;  %s772_s18 = smov %s596_s19 }
 0x1bc   : > { %s773_s19 = smov %s600_s20  ;;  %s774_s20 = smov %s675_s27 }
 0x1bd   : > { %s775_s21 = smov %s664_s24  ;;  %17 = sbr.rel (!%p15_p2) target bundleno = 3 (0x3), region = 75 }
 0x1c2   :  { %408 = vsyncpa [#allocation3], 1 }
 0x1c3   :  { %410 = vsyncpa [#allocation3 + $0x1], 1 }

</bundles_post_ra>
